<compile_context>
chip_gen: v7x
topology: tpu7x:2x2x1
jax: 0.10.0
libtpu: 0.0.40
codegen_flags: <defaults>
</compile_context>

<pallas_src>
import functools

import jax
import jax.numpy as jnp
from jax.experimental import pallas as pl
from jax.experimental.pallas import tpu as pltpu


# ------------------------------ fused kernel --------------------------------
def _engine_kernel(k0_re_ref, k0_im_ref, wsens_ref, mask_ref, wr_ref,
                   out_re_ref, out_im_ref,
                   s_re_sc, s_im_sc, img_sc, acc_sc,
                   *, B, C, TK, TN, MROWS, dcs):
    """sens_net + all cascades fused.

    out_re/out_im double as the running k-space state across cascades (constant
    output index => resident in VMEM, written back to HBM once at grid end).
    """
    c = pl.program_id(0)                 # cascade index
    nt = pl.program_id(1)                # output-column tile
    kt = pl.program_id(2)                # reduction-column tile
    n_kt = pl.num_programs(2)
    BC = B * C

    kcol = pl.multiple_of(kt * TK, TK)   # element offset of reduction tile
    ncol = pl.multiple_of(nt * TN, TN)   # element offset of output tile

    # ---- one-time init (cascade 0, first output tile): sens maps + chain state
    @pl.when((c == 0) & (nt == 0))
    def _init():
        x_re = k0_re_ref[:, pl.ds(kcol, TK)]
        x_im = k0_im_ref[:, pl.ds(kcol, TK)]
        w_re = wsens_ref[:, 0:1]                       # per (b, c) row weights
        w_im = wsens_ref[:, 1:2]
        y_re = w_re * x_re - w_im * x_im               # y = w * k   (complex)
        y_im = w_re * x_im + w_im * x_re
        mag = y_re * y_re + y_im * y_im
        rows = []
        for b in range(B):                             # RSS over coils, per batch
            sb = jnp.sum(mag[b * C:(b + 1) * C, :], axis=0, keepdims=True)
            rows.append(jnp.broadcast_to(sb, (C, TK)))
        sumsq = jnp.concatenate(rows, axis=0)
        inv_rss = jax.lax.rsqrt(sumsq + 1e-8)          # kept in f32
        s_re_sc[:, pl.ds(kcol, TK)] = y_re * inv_rss
        s_im_sc[:, pl.ds(kcol, TK)] = y_im * inv_rss
        # chain state starts as the masked k-space
        out_re_ref[:, pl.ds(kcol, TK)] = x_re
        out_im_ref[:, pl.ds(kcol, TK)] = x_im

    # ---- per-cascade sens_reduce for this K tile (done once, at nt == 0)
    @pl.when(nt == 0)
    def _reduce():
        k_re = out_re_ref[:, pl.ds(kcol, TK)]
        k_im = out_im_ref[:, pl.ds(kcol, TK)]
        s_re = s_re_sc[:, pl.ds(kcol, TK)]
        s_im = s_im_sc[:, pl.ds(kcol, TK)]
        t_re = s_re * k_re + s_im * k_im               # Re(conj(S) * k)
        t_im = s_re * k_im - s_im * k_re               # Im(conj(S) * k)
        rows = []
        for b in range(B):                             # coil-combine per batch
            rows.append(jnp.sum(t_re[b * C:(b + 1) * C, :], axis=0, keepdims=True))
        for b in range(B):
            rows.append(jnp.sum(t_im[b * C:(b + 1) * C, :], axis=0, keepdims=True))
        img = jnp.concatenate(rows, axis=0)            # (2B, TK) f32
        if MROWS > 2 * B:
            img = jnp.concatenate(
                [img, jnp.zeros((MROWS - 2 * B, TK), jnp.float32)], axis=0)
        img_sc[:, pl.ds(kcol, TK)] = img

    # ---- batched refinement matmul: (2B, TK) x (TK, TN), bf16 in / f32 acc
    @pl.when(kt == 0)
    def _zero_acc():
        acc_sc[...] = jnp.zeros_like(acc_sc)

    lhs = img_sc[:, pl.ds(kcol, TK)].astype(jnp.bfloat16)      # tiny LHS tile
    acc_sc[...] += jnp.dot(lhs, wr_ref[0], preferred_element_type=jnp.float32)

    # ---- end of reduction: sens_expand + soft data consistency for this tile
    @pl.when(kt == n_kt - 1)
    def _expand_dc():
        r = acc_sc[...]                                # (MROWS, TN) refined rows
        r_re = jnp.concatenate(
            [jnp.broadcast_to(r[b:b + 1, :], (C, TN)) for b in range(B)], axis=0)
        r_im = jnp.concatenate(
            [jnp.broadcast_to(r[B + b:B + b + 1, :], (C, TN)) for b in range(B)],
            axis=0)
        s_re = s_re_sc[:, pl.ds(ncol, TN)]
        s_im = s_im_sc[:, pl.ds(ncol, TN)]
        e_re = s_re * r_re - s_im * r_im               # E = S * refined
        e_im = s_re * r_im + s_im * r_re
        k_re = out_re_ref[:, pl.ds(ncol, TN)]
        k_im = out_im_ref[:, pl.ds(ncol, TN)]
        k0_re = k0_re_ref[:, pl.ds(ncol, TN)]
        k0_im = k0_im_ref[:, pl.ds(ncol, TN)]
        # per-cascade dc (compile-time constants, selected on cascade index)
        dc = jnp.float32(dcs[0])
        for i in range(1, len(dcs)):
            dc = jnp.where(c == i, jnp.float32(dcs[i]), dc)
        dcm = dc * mask_ref[...]                       # hoisted, reused re & im
        out_re_ref[:, pl.ds(ncol, TN)] = k_re - dcm * (k_re - k0_re) - e_re
        out_im_ref[:, pl.ds(ncol, TN)] = k_im - dcm * (k_im - k0_im) - e_im


# ------------------------------ engine forward -------------------------------
def stage3_engine_forward(masked_kspace, mask, params, *, tk=128, tn=128):
    """Mirrors Stage3Engine.forward.

    masked_kspace: [B, C, H, W, 2] float32 (fastMRI convention)
    mask:          [B, 1, 1, W, 1] float32 (0/1 sampling mask along W)
    """
    B, C, H, W, _ = masked_kspace.shape
    N = H * W
    BC = B * C
    assert N % tk == 0 and N % tn == 0, "spatial size must tile by (tk, tn)"

    # lane/sublane-dense split-complex layout: (B*C, H*W)
    k_re = masked_kspace[..., 0].reshape(BC, N)
    k_im = masked_kspace[..., 1].reshape(BC, N)

    # per-sample sampling mask, broadcast over H and coils -> (B*C, N)
    mask_bw = mask[:, 0, 0, :, 0].astype(jnp.float32)                  # (B, W)
    mask_bn = jnp.broadcast_to(mask_bw[:, None, :], (B, H, W)).reshape(B, N)
    mask_bc = jnp.broadcast_to(mask_bn[:, None, :], (B, C, N)).reshape(BC, N)

    # frozen sens-net weights, one complex weight per (b, c) row
    sens_w = jax.lax.stop_gradient(params["sens_w"])                   # (C, 2)
    wsens = jnp.tile(sens_w, (B, 1))                                   # (BC, 2)

    # cascade weights: frozen prev models + trainable final model (bf16 for MXU)
    wrs = [jax.lax.stop_gradient(w) for (w, _) in params["prev_models"]]
    dcs = [float(d) for (_, d) in params["prev_models"]]
    wr_final, dc_final = params["model"]
    wrs.append(wr_final)
    dcs.append(float(dc_final))
    wr_all = jnp.stack([w.astype(jnp.bfloat16) for w in wrs], axis=0)  # (n_casc, N, N)
    n_casc = len(dcs)

    MROWS = max(8, ((2 * B + 7) // 8) * 8)   # sublane-padded matmul LHS rows
    n_nt = N // tn
    n_kt = N // tk

    kernel = functools.partial(_engine_kernel, B=B, C=C, TK=tk, TN=tn,
                               MROWS=MROWS, dcs=tuple(dcs))

    grid_spec = pltpu.PrefetchScalarGridSpec(
        num_scalar_prefetch=0,
        grid=(n_casc, n_nt, n_kt),
        in_specs=[
            pl.BlockSpec((BC, N), lambda c, j, k: (0, 0)),         # k0 real (resident)
            pl.BlockSpec((BC, N), lambda c, j, k: (0, 0)),         # k0 imag (resident)
            pl.BlockSpec((BC, 2), lambda c, j, k: (0, 0)),         # sens weights/row
            pl.BlockSpec((BC, tn), lambda c, j, k: (0, j)),        # mask tile
            pl.BlockSpec((1, tk, tn), lambda c, j, k: (c, k, j)),  # bf16 weight tile
        ],
        out_specs=[
            pl.BlockSpec((BC, N), lambda c, j, k: (0, 0)),         # k-space state re
            pl.BlockSpec((BC, N), lambda c, j, k: (0, 0)),         # k-space state im
        ],
        scratch_shapes=[
            pltpu.VMEM((BC, N), jnp.float32),       # sens maps re
            pltpu.VMEM((BC, N), jnp.float32),       # sens maps im
            pltpu.VMEM((MROWS, N), jnp.float32),    # matmul LHS (re rows, im rows)
            pltpu.VMEM((MROWS, tn), jnp.float32),   # matmul accumulator
        ],
    )

    flops = 2 * n_casc * (2 * B) * N * N
    bytes_accessed = int(wr_all.size) * 2 + 6 * BC * N * 4
    cost = pl.CostEstimate(flops=flops, transcendentals=BC * N,
                           bytes_accessed=bytes_accessed)

    out_re, out_im = pl.pallas_call(
        kernel,
        out_shape=(jax.ShapeDtypeStruct((BC, N), jnp.float32),
                   jax.ShapeDtypeStruct((BC, N), jnp.float32)),
        grid_spec=grid_spec,
        compiler_params=pltpu.CompilerParams(
            # chain state is VMEM-resident across every axis -> no core sharding.
            dimension_semantics=("arbitrary", "arbitrary", "arbitrary")),
        cost_estimate=cost,
    )(k_re, k_im, wsens, mask_bc, wr_all)

    kspace = jnp.stack([out_re, out_im], axis=-1).reshape(B, C, H, W, 2)
    return {"kspace": kspace}


# ------------------------------- reference -----------------------------------
def _reference_forward(masked_kspace, mask, params):
    """Pure-JAX (complex64) reference with the same bf16 weight rounding."""
    B, C, H, W, _ = masked_kspace.shape
    N = H * W
    k0 = (masked_kspace[..., 0] + 1j * masked_kspace[..., 1]).reshape(B, C, N)
    m = mask[:, 0, 0, :, 0].astype(jnp.float32)                        # (B, W)
    m = jnp.broadcast_to(m[:, None, :], (B, H, W)).reshape(B, 1, N)
    w = params["sens_w"][:, 0] + 1j * params["sens_w"][:, 1]           # (C,)
    y = w[None, :, None] * k0
    s = y * jax.lax.rsqrt(jnp.sum(jnp.abs(y) ** 2, axis=1, keepdims=True) + 1e-8)

    def cascade(k, wr, dc):
        img = jnp.sum(jnp.conj(s) * k, axis=1)                         # (B, N)
        wr32 = wr.astype(jnp.bfloat16).astype(jnp.float32)
        r = (jnp.real(img) @ wr32) + 1j * (jnp.imag(img) @ wr32)
        e = s * r[:, None, :]
        return k - dc * m * (k - k0) - e

    cur = k0
    for wr, dc in params["prev_models"]:
        cur = cascade(cur, wr, dc)
    wr, dc = params["model"]
    cur = cascade(cur, wr, dc)
    return jnp.stack([jnp.real(cur), jnp.imag(cur)], axis=-1).reshape(B, C, H, W, 2)


# --------------------------------- main ---------------------------------------
def make_params(key, C, N, n_prev=2):
    keys = jax.random.split(key, n_prev + 2)
    sens_w = (jax.random.normal(keys[0], (C, 2), jnp.float32) * 0.5
              + jnp.array([[1.0, 0.0]], jnp.float32))
    prev_models = []
    for i in range(n_prev):
        wr = jax.random.normal(keys[1 + i], (N, N), jnp.float32) / float(N)
        prev_models.append((wr, 0.5))
    wr_final = jax.random.normal(keys[-1], (N, N), jnp.float32) / float(N)
    return {"sens_w": sens_w, "prev_models": prev_models,
            "model": (wr_final, 0.75)}


if __name__ == "__main__":
    B, C, H, W = 2, 4, 16, 16
    N = H * W

    key = jax.random.PRNGKey(0)
    k_data, k_params = jax.random.split(key)

    # deterministic k-space + sampling mask along W (every other column)
    kspace = jax.random.normal(k_data, (B, C, H, W, 2), jnp.float32)
    col_mask = (jnp.arange(W) % 2 == 0).astype(jnp.float32)            # (W,)
    mask = jnp.broadcast_to(col_mask.reshape(1, 1, 1, W, 1), (B, 1, 1, W, 1))
    masked_kspace = kspace * mask

    params = make_params(k_params, C, N, n_prev=2)

    out = stage3_engine_forward(masked_kspace, mask, params)
    jax.block_until_ready(out["kspace"])
    assert out["kspace"].shape == (B, C, H, W, 2)
    assert bool(jnp.all(jnp.isfinite(out["kspace"])))

    ref = _reference_forward(masked_kspace, mask, params)
    err = float(jnp.max(jnp.abs(out["kspace"] - ref)))
    assert err < 5e-2, f"max abs error vs reference: {err}"
    print("KERNEL_OK")
</pallas_src>

<mosaic_0001>
module attributes {stable_mosaic.version = 11 : i64} {
  func.func @_engine_kernel(%arg0: i32, %arg1: i32, %arg2: i32, %arg3: memref<8x256xf32, #tpu.memory_space<vmem>>, %arg4: memref<8x256xf32, #tpu.memory_space<vmem>>, %arg5: memref<8x2xf32, #tpu.memory_space<vmem>>, %arg6: memref<8x128xf32, #tpu.memory_space<vmem>>, %arg7: memref<1x128x128xbf16, #tpu.memory_space<vmem>>, %arg8: memref<8x256xf32, #tpu.memory_space<vmem>>, %arg9: memref<8x256xf32, #tpu.memory_space<vmem>>, %arg10: memref<8x256xf32, #tpu.memory_space<vmem>>, %arg11: memref<8x256xf32, #tpu.memory_space<vmem>>, %arg12: memref<8x256xf32, #tpu.memory_space<vmem>>, %arg13: memref<8x128xf32, #tpu.memory_space<vmem>>) attributes {dimension_semantics = [#tpu.dimension_semantics<arbitrary>, #tpu.dimension_semantics<arbitrary>, #tpu.dimension_semantics<arbitrary>], iteration_bounds = array<i64: 3, 2, 2>, scalar_prefetch = 0 : i64, scratch_operands = 4 : i64, tpu.core_type = #tpu.core_type<tc>, window_params = [{pipeline_mode = #tpu.pipeline_mode<synchronous>, transform_indices = @transform_0, window_bounds = array<i64: 8, 256>}, {pipeline_mode = #tpu.pipeline_mode<synchronous>, transform_indices = @transform_1, window_bounds = array<i64: 8, 256>}, {pipeline_mode = #tpu.pipeline_mode<synchronous>, transform_indices = @transform_2, window_bounds = array<i64: 8, 2>}, {transform_indices = @transform_3, window_bounds = array<i64: 8, 128>}, {transform_indices = @transform_4, window_bounds = array<i64: 1, 128, 128>}, {pipeline_mode = #tpu.pipeline_mode<synchronous>, transform_indices = @transform_5, window_bounds = array<i64: 8, 256>}, {pipeline_mode = #tpu.pipeline_mode<synchronous>, transform_indices = @transform_6, window_bounds = array<i64: 8, 256>}]} {
    %c128_i32 = arith.constant 128 : i32
    %0 = arith.muli %arg2, %c128_i32 : i32
    %1 = tpu.assume_multiple %0, 128 : i32
    %c128_i32_0 = arith.constant 128 : i32
    %2 = arith.muli %arg1, %c128_i32_0 : i32
    %3 = tpu.assume_multiple %2, 128 : i32
    %c0_i32 = arith.constant 0 : i32
    %4 = arith.cmpi eq, %arg0, %c0_i32 : i32
    %c0_i32_1 = arith.constant 0 : i32
    %5 = arith.cmpi eq, %arg1, %c0_i32_1 : i32
    %6 = arith.andi %4, %5 : i1
    %7 = arith.extui %6 : i1 to i32
    %c0_i32_2 = arith.constant 0 : i32
    %8 = arith.cmpi ne, %7, %c0_i32_2 : i32
    scf.if %8 {
      %c0_15 = arith.constant 0 : index
      %27 = arith.index_cast %1 : i32 to index
      %28 = vector.load %arg3[%c0_15, %27] : memref<8x256xf32, #tpu.memory_space<vmem>>, vector<8x128xf32>
      %c0_16 = arith.constant 0 : index
      %29 = arith.index_cast %1 : i32 to index
      %30 = vector.load %arg4[%c0_16, %29] : memref<8x256xf32, #tpu.memory_space<vmem>>, vector<8x128xf32>
      %c0_17 = arith.constant 0 : index
      %c0_18 = arith.constant 0 : index
      %31 = vector.load %arg5[%c0_17, %c0_18] : memref<8x2xf32, #tpu.memory_space<vmem>>, vector<8x1xf32>
      %c0_19 = arith.constant 0 : index
      %c1 = arith.constant 1 : index
      %32 = vector.load %arg5[%c0_19, %c1] : memref<8x2xf32, #tpu.memory_space<vmem>>, vector<8x1xf32>
      %33 = vector.broadcast %31 : vector<8x1xf32> to vector<8x128xf32>
      %34 = arith.mulf %33, %28 : vector<8x128xf32>
      %35 = vector.broadcast %32 : vector<8x1xf32> to vector<8x128xf32>
      %36 = arith.mulf %35, %30 : vector<8x128xf32>
      %37 = arith.subf %34, %36 : vector<8x128xf32>
      %38 = vector.broadcast %31 : vector<8x1xf32> to vector<8x128xf32>
      %39 = arith.mulf %38, %30 : vector<8x128xf32>
      %40 = vector.broadcast %32 : vector<8x1xf32> to vector<8x128xf32>
      %41 = arith.mulf %40, %28 : vector<8x128xf32>
      %42 = arith.addf %39, %41 : vector<8x128xf32>
      %43 = arith.mulf %37, %37 : vector<8x128xf32>
      %44 = arith.mulf %42, %42 : vector<8x128xf32>
      %45 = arith.addf %43, %44 : vector<8x128xf32>
      %46 = vector.extract_strided_slice %45 {offsets = [0, 0], sizes = [4, 128], strides = [1, 1]} : vector<8x128xf32> to vector<4x128xf32>
      %cst_20 = arith.constant dense<0.000000e+00> : vector<128xf32>
      %47 = vector.multi_reduction <add>, %46, %cst_20 [0] : vector<4x128xf32> to vector<128xf32>
      %48 = vector.shape_cast %47 : vector<128xf32> to vector<1x128xf32>
      %49 = vector.shape_cast %48 : vector<1x128xf32> to vector<1x128xf32>
      %50 = vector.broadcast %49 : vector<1x128xf32> to vector<4x128xf32>
      %51 = vector.extract_strided_slice %45 {offsets = [4, 0], sizes = [4, 128], strides = [1, 1]} : vector<8x128xf32> to vector<4x128xf32>
      %cst_21 = arith.constant dense<0.000000e+00> : vector<128xf32>
      %52 = vector.multi_reduction <add>, %51, %cst_21 [0] : vector<4x128xf32> to vector<128xf32>
      %53 = vector.shape_cast %52 : vector<128xf32> to vector<1x128xf32>
      %54 = vector.shape_cast %53 : vector<1x128xf32> to vector<1x128xf32>
      %55 = vector.broadcast %54 : vector<1x128xf32> to vector<4x128xf32>
      %56 = tpu.concatenate %50, %55 in 0 : vector<4x128xf32>, vector<4x128xf32> -> vector<8x128xf32>
      %cst_22 = arith.constant 9.99999993E-9 : f32
      %57 = vector.broadcast %cst_22 : f32 to vector<8x128xf32>
      %58 = arith.addf %56, %57 : vector<8x128xf32>
      %59 = math.rsqrt %58 : vector<8x128xf32>
      %60 = arith.mulf %37, %59 : vector<8x128xf32>
      %c0_23 = arith.constant 0 : index
      %61 = arith.index_cast %1 : i32 to index
      %62 = vector.load %arg10[%c0_23, %61] : memref<8x256xf32, #tpu.memory_space<vmem>>, vector<8x128xf32>
      tpu.vector_store %arg10[%c0_23, %61], %60 {strides = array<i32>} : memref<8x256xf32, #tpu.memory_space<vmem>>, vector<8x128xf32>,
      %63 = arith.mulf %42, %59 : vector<8x128xf32>
      %c0_24 = arith.constant 0 : index
      %64 = arith.index_cast %1 : i32 to index
      %65 = vector.load %arg11[%c0_24, %64] : memref<8x256xf32, #tpu.memory_space<vmem>>, vector<8x128xf32>
      tpu.vector_store %arg11[%c0_24, %64], %63 {strides = array<i32>} : memref<8x256xf32, #tpu.memory_space<vmem>>, vector<8x128xf32>,
      %c0_25 = arith.constant 0 : index
      %66 = arith.index_cast %1 : i32 to index
      %67 = vector.load %arg8[%c0_25, %66] : memref<8x256xf32, #tpu.memory_space<vmem>>, vector<8x128xf32>
      tpu.vector_store %arg8[%c0_25, %66], %28 {strides = array<i32>} : memref<8x256xf32, #tpu.memory_space<vmem>>, vector<8x128xf32>,
      %c0_26 = arith.constant 0 : index
      %68 = arith.index_cast %1 : i32 to index
      %69 = vector.load %arg9[%c0_26, %68] : memref<8x256xf32, #tpu.memory_space<vmem>>, vector<8x128xf32>
      tpu.vector_store %arg9[%c0_26, %68], %30 {strides = array<i32>} : memref<8x256xf32, #tpu.memory_space<vmem>>, vector<8x128xf32>,
    } else {
    }
    %c0_i32_3 = arith.constant 0 : i32
    %9 = arith.cmpi eq, %arg1, %c0_i32_3 : i32
    %10 = arith.extui %9 : i1 to i32
    %c0_i32_4 = arith.constant 0 : i32
    %11 = arith.cmpi ne, %10, %c0_i32_4 : i32
    scf.if %11 {
      %c0_15 = arith.constant 0 : index
      %27 = arith.index_cast %1 : i32 to index
      %28 = vector.load %arg8[%c0_15, %27] : memref<8x256xf32, #tpu.memory_space<vmem>>, vector<8x128xf32>
      %c0_16 = arith.constant 0 : index
      %29 = arith.index_cast %1 : i32 to index
      %30 = vector.load %arg9[%c0_16, %29] : memref<8x256xf32, #tpu.memory_space<vmem>>, vector<8x128xf32>
      %c0_17 = arith.constant 0 : index
      %31 = arith.index_cast %1 : i32 to index
      %32 = vector.load %arg10[%c0_17, %31] : memref<8x256xf32, #tpu.memory_space<vmem>>, vector<8x128xf32>
      %c0_18 = arith.constant 0 : index
      %33 = arith.index_cast %1 : i32 to index
      %34 = vector.load %arg11[%c0_18, %33] : memref<8x256xf32, #tpu.memory_space<vmem>>, vector<8x128xf32>
      %35 = arith.mulf %32, %28 : vector<8x128xf32>
      %36 = arith.mulf %34, %30 : vector<8x128xf32>
      %37 = arith.addf %35, %36 : vector<8x128xf32>
      %38 = arith.mulf %32, %30 : vector<8x128xf32>
      %39 = arith.mulf %34, %28 : vector<8x128xf32>
      %40 = arith.subf %38, %39 : vector<8x128xf32>
      %41 = vector.extract_strided_slice %37 {offsets = [0, 0], sizes = [4, 128], strides = [1, 1]} : vector<8x128xf32> to vector<4x128xf32>
      %cst_19 = arith.constant dense<0.000000e+00> : vector<128xf32>
      %42 = vector.multi_reduction <add>, %41, %cst_19 [0] : vector<4x128xf32> to vector<128xf32>
      %43 = vector.shape_cast %42 : vector<128xf32> to vector<1x128xf32>
      %44 = vector.extract_strided_slice %37 {offsets = [4, 0], sizes = [4, 128], strides = [1, 1]} : vector<8x128xf32> to vector<4x128xf32>
      %cst_20 = arith.constant dense<0.000000e+00> : vector<128xf32>
      %45 = vector.multi_reduction <add>, %44, %cst_20 [0] : vector<4x128xf32> to vector<128xf32>
      %46 = vector.shape_cast %45 : vector<128xf32> to vector<1x128xf32>
      %47 = vector.extract_strided_slice %40 {offsets = [0, 0], sizes = [4, 128], strides = [1, 1]} : vector<8x128xf32> to vector<4x128xf32>
      %cst_21 = arith.constant dense<0.000000e+00> : vector<128xf32>
      %48 = vector.multi_reduction <add>, %47, %cst_21 [0] : vector<4x128xf32> to vector<128xf32>
      %49 = vector.shape_cast %48 : vector<128xf32> to vector<1x128xf32>
      %50 = vector.extract_strided_slice %40 {offsets = [4, 0], sizes = [4, 128], strides = [1, 1]} : vector<8x128xf32> to vector<4x128xf32>
      %cst_22 = arith.constant dense<0.000000e+00> : vector<128xf32>
      %51 = vector.multi_reduction <add>, %50, %cst_22 [0] : vector<4x128xf32> to vector<128xf32>
      %52 = vector.shape_cast %51 : vector<128xf32> to vector<1x128xf32>
      %53 = tpu.concatenate %43, %46, %49, %52 in 0 : vector<1x128xf32>, vector<1x128xf32>, vector<1x128xf32>, vector<1x128xf32> -> vector<4x128xf32>
      %cst_23 = arith.constant 0.000000e+00 : f32
      %54 = vector.broadcast %cst_23 : f32 to vector<4x128xf32>
      %55 = tpu.concatenate %53, %54 in 0 : vector<4x128xf32>, vector<4x128xf32> -> vector<8x128xf32>
      %c0_24 = arith.constant 0 : index
      %56 = arith.index_cast %1 : i32 to index
      %57 = vector.load %arg12[%c0_24, %56] : memref<8x256xf32, #tpu.memory_space<vmem>>, vector<8x128xf32>
      tpu.vector_store %arg12[%c0_24, %56], %55 {strides = array<i32>} : memref<8x256xf32, #tpu.memory_space<vmem>>, vector<8x128xf32>,
    } else {
    }
    %c0_i32_5 = arith.constant 0 : i32
    %12 = arith.cmpi eq, %arg2, %c0_i32_5 : i32
    %13 = arith.extui %12 : i1 to i32
    %c0_i32_6 = arith.constant 0 : i32
    %14 = arith.cmpi ne, %13, %c0_i32_6 : i32
    scf.if %14 {
      %cst_15 = arith.constant 0.000000e+00 : f32
      %27 = vector.broadcast %cst_15 : f32 to vector<8x128xf32>
      %c0_16 = arith.constant 0 : index
      %c0_17 = arith.constant 0 : index
      %28 = vector.load %arg13[%c0_16, %c0_17] : memref<8x128xf32, #tpu.memory_space<vmem>>, vector<8x128xf32>
      tpu.vector_store %arg13[%c0_16, %c0_17], %27 {strides = array<i32>} : memref<8x128xf32, #tpu.memory_space<vmem>>, vector<8x128xf32>,
    } else {
    }
    %c0 = arith.constant 0 : index
    %15 = arith.index_cast %1 : i32 to index
    %16 = vector.load %arg12[%c0, %15] : memref<8x256xf32, #tpu.memory_space<vmem>>, vector<8x128xf32>
    %17 = arith.truncf %16 : vector<8x128xf32> to vector<8x128xbf16>
    %c0_7 = arith.constant 0 : index
    %c0_8 = arith.constant 0 : index
    %18 = vector.load %arg13[%c0_7, %c0_8] : memref<8x128xf32, #tpu.memory_space<vmem>>, vector<8x128xf32>
    %c0_9 = arith.constant 0 : index
    %c0_10 = arith.constant 0 : index
    %c0_11 = arith.constant 0 : index
    %19 = vector.load %arg7[%c0_9, %c0_10, %c0_11] : memref<1x128x128xbf16, #tpu.memory_space<vmem>>, vector<1x128x128xbf16>
    %20 = vector.shape_cast %19 : vector<1x128x128xbf16> to vector<128x128xbf16>
    %cst = arith.constant dense<0.000000e+00> : vector<8x128xf32>
    %21 = tpu.matmul %17, %20, %cst {dimension_numbers = #tpu.dot_dimension_numbers<[1], [0], [0], [1], [0, 0, 1, 1], [], []>} : vector<8x128xbf16>, vector<128x128xbf16>, vector<8x128xf32> -> vector<8x128xf32>
    %22 = arith.addf %18, %21 : vector<8x128xf32>
    %c0_12 = arith.constant 0 : index
    %c0_13 = arith.constant 0 : index
    %23 = vector.load %arg13[%c0_12, %c0_13] : memref<8x128xf32, #tpu.memory_space<vmem>>, vector<8x128xf32>
    tpu.vector_store %arg13[%c0_12, %c0_13], %22 {strides = array<i32>} : memref<8x128xf32, #tpu.memory_space<vmem>>, vector<8x128xf32>,
    %c1_i32 = arith.constant 1 : i32
    %24 = arith.cmpi eq, %arg2, %c1_i32 : i32
    %25 = arith.extui %24 : i1 to i32
    %c0_i32_14 = arith.constant 0 : i32
    %26 = arith.cmpi ne, %25, %c0_i32_14 : i32
    scf.if %26 {
      %c0_15 = arith.constant 0 : index
      %c0_16 = arith.constant 0 : index
      %27 = vector.load %arg13[%c0_15, %c0_16] : memref<8x128xf32, #tpu.memory_space<vmem>>, vector<8x128xf32>
      %28 = vector.extract_strided_slice %27 {offsets = [0, 0], sizes = [1, 128], strides = [1, 1]} : vector<8x128xf32> to vector<1x128xf32>
      %29 = vector.shape_cast %28 : vector<1x128xf32> to vector<1x128xf32>
      %30 = vector.broadcast %29 : vector<1x128xf32> to vector<4x128xf32>
      %31 = vector.extract_strided_slice %27 {offsets = [1, 0], sizes = [1, 128], strides = [1, 1]} : vector<8x128xf32> to vector<1x128xf32>
      %32 = vector.shape_cast %31 : vector<1x128xf32> to vector<1x128xf32>
      %33 = vector.broadcast %32 : vector<1x128xf32> to vector<4x128xf32>
      %34 = tpu.concatenate %30, %33 in 0 : vector<4x128xf32>, vector<4x128xf32> -> vector<8x128xf32>
      %35 = vector.extract_strided_slice %27 {offsets = [2, 0], sizes = [1, 128], strides = [1, 1]} : vector<8x128xf32> to vector<1x128xf32>
      %36 = vector.shape_cast %35 : vector<1x128xf32> to vector<1x128xf32>
      %37 = vector.broadcast %36 : vector<1x128xf32> to vector<4x128xf32>
      %38 = vector.extract_strided_slice %27 {offsets = [3, 0], sizes = [1, 128], strides = [1, 1]} : vector<8x128xf32> to vector<1x128xf32>
      %39 = vector.shape_cast %38 : vector<1x128xf32> to vector<1x128xf32>
      %40 = vector.broadcast %39 : vector<1x128xf32> to vector<4x128xf32>
      %41 = tpu.concatenate %37, %40 in 0 : vector<4x128xf32>, vector<4x128xf32> -> vector<8x128xf32>
      %c0_17 = arith.constant 0 : index
      %42 = arith.index_cast %3 : i32 to index
      %43 = vector.load %arg10[%c0_17, %42] : memref<8x256xf32, #tpu.memory_space<vmem>>, vector<8x128xf32>
      %c0_18 = arith.constant 0 : index
      %44 = arith.index_cast %3 : i32 to index
      %45 = vector.load %arg11[%c0_18, %44] : memref<8x256xf32, #tpu.memory_space<vmem>>, vector<8x128xf32>
      %46 = arith.mulf %43, %34 : vector<8x128xf32>
      %47 = arith.mulf %45, %41 : vector<8x128xf32>
      %48 = arith.subf %46, %47 : vector<8x128xf32>
      %49 = arith.mulf %43, %41 : vector<8x128xf32>
      %50 = arith.mulf %45, %34 : vector<8x128xf32>
      %51 = arith.addf %49, %50 : vector<8x128xf32>
      %c0_19 = arith.constant 0 : index
      %52 = arith.index_cast %3 : i32 to index
      %53 = vector.load %arg8[%c0_19, %52] : memref<8x256xf32, #tpu.memory_space<vmem>>, vector<8x128xf32>
      %c0_20 = arith.constant 0 : index
      %54 = arith.index_cast %3 : i32 to index
      %55 = vector.load %arg9[%c0_20, %54] : memref<8x256xf32, #tpu.memory_space<vmem>>, vector<8x128xf32>
      %c0_21 = arith.constant 0 : index
      %56 = arith.index_cast %3 : i32 to index
      %57 = vector.load %arg3[%c0_21, %56] : memref<8x256xf32, #tpu.memory_space<vmem>>, vector<8x128xf32>
      %c0_22 = arith.constant 0 : index
      %58 = arith.index_cast %3 : i32 to index
      %59 = vector.load %arg4[%c0_22, %58] : memref<8x256xf32, #tpu.memory_space<vmem>>, vector<8x128xf32>
      %c1_i32_23 = arith.constant 1 : i32
      %60 = arith.cmpi eq, %arg0, %c1_i32_23 : i32
      %cst_24 = arith.constant 5.000000e-01 : f32
      %cst_25 = arith.constant 5.000000e-01 : f32
      %61 = arith.select %60, %cst_24, %cst_25 : f32
      %c2_i32 = arith.constant 2 : i32
      %62 = arith.cmpi eq, %arg0, %c2_i32 : i32
      %cst_26 = arith.constant 7.500000e-01 : f32
      %63 = arith.select %62, %cst_26, %61 : f32
      %c0_27 = arith.constant 0 : index
      %c0_28 = arith.constant 0 : index
      %64 = vector.load %arg6[%c0_27, %c0_28] : memref<8x128xf32, #tpu.memory_space<vmem>>, vector<8x128xf32>
      %65 = vector.broadcast %63 : f32 to vector<8x128xf32>
      %66 = arith.mulf %65, %64 : vector<8x128xf32>
      %67 = arith.subf %53, %57 : vector<8x128xf32>
      %68 = arith.mulf %66, %67 : vector<8x128xf32>
      %69 = arith.subf %53, %68 : vector<8x128xf32>
      %70 = arith.subf %69, %48 : vector<8x128xf32>
      %c0_29 = arith.constant 0 : index
      %71 = arith.index_cast %3 : i32 to index
      %72 = vector.load %arg8[%c0_29, %71] : memref<8x256xf32, #tpu.memory_space<vmem>>, vector<8x128xf32>
      tpu.vector_store %arg8[%c0_29, %71], %70 {strides = array<i32>} : memref<8x256xf32, #tpu.memory_space<vmem>>, vector<8x128xf32>,
      %73 = arith.subf %55, %59 : vector<8x128xf32>
      %74 = arith.mulf %66, %73 : vector<8x128xf32>
      %75 = arith.subf %55, %74 : vector<8x128xf32>
      %76 = arith.subf %75, %51 : vector<8x128xf32>
      %c0_30 = arith.constant 0 : index
      %77 = arith.index_cast %3 : i32 to index
      %78 = vector.load %arg9[%c0_30, %77] : memref<8x256xf32, #tpu.memory_space<vmem>>, vector<8x128xf32>
      tpu.vector_store %arg9[%c0_30, %77], %76 {strides = array<i32>} : memref<8x256xf32, #tpu.memory_space<vmem>>, vector<8x128xf32>,
    } else {
    }
    return
  }
  func.func @transform_0(%arg0: i32, %arg1: i32, %arg2: i32) -> (i32, i32) {
    %c0_i32 = arith.constant 0 : i32
    %c0_i32_0 = arith.constant 0 : i32
    %c0_i32_1 = arith.constant 0 : i32
    return %c0_i32, %c0_i32_0 : i32, i32
  }
  func.func @transform_1(%arg0: i32, %arg1: i32, %arg2: i32) -> (i32, i32) {
    %c0_i32 = arith.constant 0 : i32
    %c0_i32_0 = arith.constant 0 : i32
    %c0_i32_1 = arith.constant 0 : i32
    return %c0_i32, %c0_i32_0 : i32, i32
  }
  func.func @transform_2(%arg0: i32, %arg1: i32, %arg2: i32) -> (i32, i32) {
    %c0_i32 = arith.constant 0 : i32
    %c0_i32_0 = arith.constant 0 : i32
    %c0_i32_1 = arith.constant 0 : i32
    return %c0_i32, %c0_i32_0 : i32, i32
  }
  func.func @transform_3(%arg0: i32, %arg1: i32, %arg2: i32) -> (i32, i32) {
    %c0_i32 = arith.constant 0 : i32
    %c0_i32_0 = arith.constant 0 : i32
    return %c0_i32, %arg1 : i32, i32
  }
  func.func @transform_4(%arg0: i32, %arg1: i32, %arg2: i32) -> (i32, i32, i32) {
    %c0_i32 = arith.constant 0 : i32
    return %arg0, %arg2, %arg1 : i32, i32, i32
  }
  func.func @transform_5(%arg0: i32, %arg1: i32, %arg2: i32) -> (i32, i32) {
    %c0_i32 = arith.constant 0 : i32
    %c0_i32_0 = arith.constant 0 : i32
    %c0_i32_1 = arith.constant 0 : i32
    return %c0_i32, %c0_i32_0 : i32, i32
  }
  func.func @transform_6(%arg0: i32, %arg1: i32, %arg2: i32) -> (i32, i32) {
    %c0_i32 = arith.constant 0 : i32
    %c0_i32_0 = arith.constant 0 : i32
    %c0_i32_1 = arith.constant 0 : i32
    return %c0_i32, %c0_i32_0 : i32, i32
  }
}

</mosaic_0001>

<bundles_post_ra>
// kernel: tpu_custom_call.1
= control target key start
LH: loop header
LB: loop body
LE: loop exit
PB: predicated region body
PF: predicated region fallthrough
CT: control target
= control target key end

     0   :  { %s1690_s0 = inlined_call_operand.hbm [shape: f32[8,256], index: 0, kind: input, shape index: {}]   ;;  %s1691_s1 = inlined_call_operand.hbm [shape: f32[8,256], index: 1, kind: input, shape index: {}]   ;;  %s1692_s2 = inlined_call_operand.vmem [shape: f32[8,2], index: 2, kind: input, shape index: {}]   ;;  %s1693_s3 = inlined_call_operand.vmem [shape: f32[8,256], index: 3, kind: input, shape index: {}]   ;;  %s1694_s4 = inlined_call_operand.hbm [shape: bf16[3,256,256], index: 4, kind: input, shape index: {}]   ;;  %s1695_s5 = inlined_call_operand.hbm [shape: f32[8,256], index: 5, kind: output, shape index: {0}]   ;;  %s1696_s6 = inlined_call_operand.hbm [shape: f32[8,256], index: 6, kind: output, shape index: {1}]  }
   0x1   :  { %1706 = sst [smem:[#allocation24_spill]] %s1690_s0 }
   0x2   :  { %1707 = sst [smem:[#allocation25_spill]] %s1695_s5 }
   0x3   :  { %1708 = sst [smem:[#allocation26_spill]] %s1696_s6 }
   0x4   :  { %12 = vsyncpa [#allocation7], 0 }
   0x5   :  { %13 = vsyncpa [#allocation10], 0 }
   0x6   :  { %14 = vsyncpa [#allocation8], 0 }
   0x7   :  { %15 = vsyncpa [#allocation14], 0  ;;  %s1325_s21 = smov 0   ;;  %s1327_s22 = smov 0  }
   0x8   :  { %s1329_s23 = smov 0   ;;  %s1331_s24 = smov 0  }
   0x9   :  { %s1333_s25 = smov 0   ;;  %s1335_s26 = smov 0  }
   0xa   :  { %s1337_s27 = smov 0   ;;  %s1339_s28 = smov 0  }
   0xb   :  { %s1341_s29 = smov 0   ;;  %s1343_s30 = smov 0  }
   0xc LB: > { %s1374_s7 = sadd.s32 4294967295, %s1275_s30   ;;  %s33_s8 = sadd.s32 1, %s1263_s27  ;;  %s1275_s30 = sphi %s1343_s30, %s21_s30   ;;  %s1271_s29 = sphi %s1341_s29, %s1743_s29   ;;  %s1267_s28 = sphi %s1339_s28, %s1742_s28   ;;  %s1263_s27 = sphi %s1337_s27, %s1741_s27   ;;  %s1259_s26 = sphi %s1335_s26, %s1740_s26   ;;  %s1255_s25 = sphi %s1333_s25, %s1739_s25   ;;  %s1251_s24 = sphi %s1331_s24, %s1738_s24   ;;  %s1247_s23 = sphi %s1329_s23, %s1737_s23   ;;  %s1243_s22 = sphi %s1327_s22, %s1736_s22   ;;  %s1239_s21 = sphi %s1325_s21, %s1735_s21  }
   0xd   : > { %p34_p0 = scmp.ge.s32.totalorder %s33_s8, 2  ;;  %s36_s9 = sadd.s32 1, %s1267_s28 }
   0xe   : > { %s40_s10 = sadd.s32 1, %s1271_s29  ;;  %s140_s11 = sadd.s32 1, %s1247_s23 }
   0xf   : > { %s1745_s8 = smov (%p34_p0, %s33_s8), 0  ;;  %s1747_s9 = smov (!%p34_p0, %s36_s9), %s1267_s28 }
  0x10   : > { %1709 = sst [smem:[#allocation20_spill]] %s1745_s8  ;;  %s134_s12 = ssub.s32 %s1263_s27, %s1745_s8 }
  0x11   : > { %p147_p1 = scmp.ne.s32.totalorder %s1247_s23, %s1243_s22  ;;  %p38_p2 = scmp.ge.s32.totalorder %s1747_s9, 2 }
  0x12   : > { %p148_p3 = scmp.eq.s32.totalorder %s1275_s30, 0  ;;  %p153_p4 = scmp.ne.s32.totalorder %s1243_s22, %s1239_s21 }
  0x13   : > { %p1701_p5 = scmp.eq.s32.totalorder %s1374_s7, 0  ;;  %s1749_s9 = smov (%p38_p2, %s1747_s9), 0 }
  0x14   : > { %1710 = sst [smem:[#allocation21_spill]] %s1749_s9  ;;  %s1751_s10 = smov (!%p38_p2, %s40_s10), %s1271_s29 }
  0x15   : > { %s136_s13 = ssub.s32 %s1267_s28, %s1749_s9  ;;  %p1395_p6 = por %p148_p3, %p147_p1 }
  0x16   : > { %p42_p7 = scmp.ge.s32.totalorder %s1751_s10, 3  ;;  %p1401_p8 = por %p1701_p5, %p153_p4 }
  0x17   : > { %s1711_s14 = scalar_select %p1395_p6, 1, 0 }
  0x18   : > { %s1712_s15 = scalar_select %p1401_p8, 1, 0 }
  0x19   : > { %p816_p9 = scmp.ge.s32.totalorder %s1275_s30, 1  ;;  %p206_p10 = scmp.lt.s32.totalorder %s1275_s30, 13 }
  0x1a   : > { %s1753_s10 = smov (%p42_p7, %s1751_s10), 0  ;;  %s1277_s20 = smov [#allocation6]  }
  0x1b   : > { %1713 = sst [smem:[#allocation22_spill]] %s1753_s10  ;;  %p1409_p11 = pnand %p816_p9, %p206_p10 }
  0x1c   : > { %s133_s17 = ssub.s32 %s1271_s29, %s1753_s10  ;;  %s219_s21 = sshll.u32 %s1277_s20, 4  ;;  %s220_s21 = int_to_ptr.vmem [resolvable:$true] %s219_s21 }
  0x1d   : > { %s1714_s16 = scalar_select %p1409_p11, 1, 0 }
  0x1e   : > { %s135_s18 = sor.u32 %s134_s12, %s133_s17  ;;  %p915_p12 = pneg %p1409_p11 }
  0x1f   : > { %s137_s19 = sor.u32 %s136_s13, %s135_s18  ;;  %s1717_s0 = sld [smem:[#allocation24_spill]] }
  0x20   : > { %p138_p13 = scmp.eq.s32.totalorder %s137_s19, 0  ;;  %p1419_p0 = pnand %p915_p12, %p1701_p5 }
  0x22   : > { %s1424_s8 = scalar_select %p138_p13, %s1247_s23, %s140_s11  }
  0x23   : > { %p1041_p3 = pneg %p1419_p0 }
  0x24   : > { %1716 = sst [smem:[#allocation23_spill]] %s1424_s8 }
  0x25   : > { %s1039_s12 = scalar_lea.hbm %s1717_s0, 256 }
  0x26   : > { %p1040_p2 = scmp.ne.s32.totalorder %s1717_s0, %s1039_s12  ;;  %p1046_p9 = scmp.lt.u32.totalorder %s1039_s12, %s1717_s0 }
  0x28   : > { %p1042_p4 = pnand %p1041_p3, %p1040_p2 }
  0x2a   : > { %p1043_p7 = pneg %p1042_p4 }
  0x2c   : > { %p1048_p10 = pnand %p1046_p9, %p1043_p7 }
  0x2e   : > { %1051 = shalt.err (!%p1048_p10)
}
  0x2f   : > { %s1052_s11 = scalar_lea.vmem %s220_s21, 256  ;;  %p1060_p1 = scmp.lt.s32.totalorder %s220_s21, %s220_s21 }
  0x30   : > { %p1053_p12 = scmp.ne.s32.totalorder %s220_s21, %s1052_s11  ;;  %p1061_p8 = scmp.lt.s32.totalorder %s1052_s11, %s1052_s11 }
  0x32   : > { %p1055_p13 = pnand %p1053_p12, %p1041_p3  ;;  %p1062_p11 = por %p1061_p8, %p1060_p1 }
  0x34   : > { %p1056_p5 = pneg %p1055_p13 }
  0x36   : > { %p1063_p6 = pnand %p1062_p11, %p1056_p5 }
  0x38   : > { %1066 = shalt.err (!%p1063_p6)
}
  0x39   : > { %918 = dma.hbm_to_vmem [thread:$0]  (!%p1419_p0), %s1717_s0, 256, %s220_s21, [#allocation7]  }
  0x3a   : > { %p1718_p2 = scmp.ne.s32.totalorder %s1711_s14, 0  ;;  %p1719_p4 = scmp.lt.s32.totalorder %s1275_s30, 12 }
  0x3b   : > { %s1278_s12 = smov [#allocation9]   ;;  %s1067_s11 = scalar_lea.hbm %s1691_s1, 256 }
  0x3c   : > { %p1453_p7 = pnand %p1719_p4, %p1718_p2  ;;  %s230_s17 = sshll.u32 %s1278_s12, 4  ;;  %s231_s17 = int_to_ptr.vmem [resolvable:$true] %s230_s17 }
  0x3d   : > { %p1068_p5 = scmp.ne.s32.totalorder %s1691_s1, %s1067_s11  ;;  %p1074_p11 = scmp.lt.u32.totalorder %s1067_s11, %s1691_s1 }
  0x3e   : > { %s1720_s20 = scalar_select %p1453_p7, 1, 0 }
  0x3f   : > { %p1070_p6 = pnand %p1068_p5, %p1041_p3 }
  0x41   : > { %p1071_p8 = pneg %p1070_p6 }
  0x43   : > { %p1076_p1 = pnand %p1074_p11, %p1071_p8 }
  0x45   : > { %1079 = shalt.err (!%p1076_p1)
}
  0x46   : > { %s1080_s12 = scalar_lea.vmem %s231_s17, 256  ;;  %p1088_p13 = scmp.lt.s32.totalorder %s231_s17, %s231_s17 }
  0x47   : > { %p1081_p9 = scmp.ne.s32.totalorder %s231_s17, %s1080_s12  ;;  %p1089_p2 = scmp.lt.s32.totalorder %s1080_s12, %s1080_s12 }
  0x49   : > { %p1083_p10 = pnand %p1081_p9, %p1041_p3  ;;  %p1090_p4 = por %p1089_p2, %p1088_p13 }
  0x4b   : > { %p1084_p12 = pneg %p1083_p10 }
  0x4d   : > { %p1091_p7 = pnand %p1090_p4, %p1084_p12 }
  0x4f   : > { %1094 = shalt.err (!%p1091_p7)
}
  0x50   : > { %921 = dma.hbm_to_vmem [thread:$0]  (!%p1419_p0), %s1691_s1, 256, %s231_s17, [#allocation10]  }
  0x51   : > { %s253_s11 = sand.u32 1, %s1247_s23   ;;  %s867_s10 = sshll.u32 %s1263_s27, 5 }
  0x52   : > { %s820_s6 = sshll.u32 %s253_s11, 6  ;;  %s261_s14 = sadd.s32 %s1267_s28, %s867_s10 }
  0x53   : > { %s823_s21 = sshll.u32 %s1271_s29, 6  ;;  %s255_s12 = scalar_lea.vmem [#allocation11], %s820_s6 }
  0x54   : > { %s266_s13 = sshll.u32 %s255_s12, 4  ;;  %s263_s0 = sadd.s32 %s823_s21, %s261_s14  ;;  %s1482_s13 = int_to_ptr.vmem [resolvable:$true] %s266_s13 }
  0x55   : > { %s824_s9 = sshll.u32 %s263_s0, 6  ;;  %s1721_s5 = sand.u32 1, %s1275_s30  }
  0x56   : > { %s1487_s8 = scalar_lea.hbm %s1694_s4, %s824_s9  ;;  %s1491_s17 = scalar_lea.sflag [#allocation7], %s1721_s5 }
  0x57   : > { %s1095_s11 = scalar_lea.hbm %s1487_s8, 1024  ;;  %p1722_p3 = scmp.ne.s32.totalorder %s1720_s20, 0 }
  0x58   : > { %p1096_p0 = scmp.ne.s32.totalorder %s1487_s8, %s1095_s11  ;;  %s1100_s10 = scalar_lea.hbm %s1694_s4, 12288 }
  0x59   : > { %p1097_p7 = pneg %p1722_p3  ;;  %p1101_p8 = scmp.lt.u32.totalorder %s1487_s8, %s1694_s4 }
  0x5a   : > { %p1102_p11 = scmp.lt.u32.totalorder %s1100_s10, %s1095_s11  ;;  %p1104_p9 = scmp.lt.u32.totalorder %s1095_s11, %s1487_s8 }
  0x5b   : > { %p1098_p5 = pnand %p1097_p7, %p1096_p0 }
  0x5c   : > { %p1103_p1 = por %p1102_p11, %p1101_p8 }
  0x5d   : > { %p1099_p6 = pneg %p1098_p5 }
  0x5e   : > { %p1105_p10 = por %p1104_p9, %p1103_p1 }
  0x60   : > { %p1106_p12 = pnand %p1105_p10, %p1099_p6 }
  0x62   : > { %1109 = shalt.err (!%p1106_p12)
}
  0x63   : > { %s1110_s5 = scalar_lea.vmem %s1482_s13, 1024  ;;  %s1279_s12 = smov [#allocation11]  }
  0x64   : > { %p1111_p13 = scmp.ne.s32.totalorder %s1482_s13, %s1110_s5  ;;  %s1115_s9 = sshll.u32 %s1279_s12, 4  ;;  %s1116_s9 = int_to_ptr.vmem [resolvable:$false] %s1115_s9 }
  0x65   : > { %s1117_s18 = scalar_lea.vmem %s1116_s9, 2048  ;;  %p1118_p0 = scmp.lt.s32.totalorder %s1482_s13, %s1116_s9 }
  0x66   : > { %p1113_p2 = pnand %p1111_p13, %p1097_p7  ;;  %p1119_p5 = scmp.lt.s32.totalorder %s1117_s18, %s1110_s5 }
  0x68   : > { %p1114_p4 = pneg %p1113_p2  ;;  %p1120_p8 = por %p1119_p5, %p1118_p0 }
  0x6a   : > { %p1121_p11 = pnand %p1120_p8, %p1114_p4 }
  0x6c   : > { %1124 = shalt.err (!%p1121_p11)
}
  0x6d   : > { %s1280_s19 = smov 128   ;;  %s1281_s11 = smov 64  }
  0x6e   : > { %s1282_s0 = smov 4   ;;  %p1723_p7 = scmp.ne.s32.totalorder %s1714_s16, 0 }
  0x6f   : > { %925 = dma.hbm_to_vmem [thread:$0]  (!%p1722_p3), %s1487_s8, 1024, %s1482_s13, %s1491_s17, %s1280_s19, %s1281_s11, %s1282_s0  }
  0x70   : > { %278 = sbr.rel (%p1723_p7) target bundleno = 676 (0x2a4), region = 40  ;;  %p1724_p6 = scmp.eq.s32.totalorder (!%p1723_p7), %s1374_s7, 0 }
  0x77   : > { %1218 = dma.done.wait (%p1724_p6), [#allocation7], 256   ;;  %p1725_p1 = pmov %p1724_p6 }
  0x79   : > { %1220 = vsyncadd (%p1725_p1), [#allocation7], 4294967040  ;;  %p1726_p9 = pmov %p1725_p1 }
  0x7a   : > { %p1727_p10 = pmov %p1725_p1 }
  0x7b   : > { %1222 = dma.done.wait (%p1726_p9), [#allocation10], 256  }
  0x7c   : > { %1224 = vsyncadd (%p1727_p10), [#allocation10], 4294967040  ;;  %s288_s20 = sand.u32 1, %s1374_s7   ;;  %s290_s8 = sand.u32 1, %s1243_s22  }
  0x7d   : > { %s828_s13 = sshll.u32 %s290_s8, 6  ;;  %s289_s16 = scalar_lea.sflag [#allocation7], %s288_s20 }
  0x7e   : > { %s1531_s17 = scalar_lea.vmem [#allocation11], %s828_s13  ;;  %p1728_p3 = scmp.ne.s32.totalorder %s1712_s15, 0 }
  0x80   : > { %1226 = dma.done.wait (%p1728_p3), %s289_s16, 1024  }
  0x81   : > { %1228 = vsyncadd (%p1728_p3), %s289_s16, 4294966272  ;;  %p320_p12 = scmp.lt.s32.totalorder %s1255_s25, 1  ;;  %s1539_s6 = sshll.u32 %s1251_s24, 7 }
  0x82   : > { %s831_s10 = sshll.u32 %s1255_s25, 7  ;;  %p328_p13 = scmp.eq.s32.totalorder %s1259_s26, 0 }
  0x83   : > { %s321_s14 = scalar_select %p320_p12, %s1255_s25, 1 }
  0x84   : > { %p329_p2 = scmp.eq.s32.totalorder %s1255_s25, 0 }
  0x85   : > { %s829_s21 = sshll.u32 %s321_s14, 3 }
  0x86   : > { %s1548_s9 = scalar_lea.vmem %s1693_s3, %s829_s21  ;;  %p330_p4 = pnand %p329_p2, %p328_p13 }
  0x87   : > { %v342_v0 = vld [vmem:[%s1692_s2] sm:$0xff] (!%p330_p4)  ;;  %s334_s19 = sshra.s32 (!%p330_p4), %s1539_s6, 7  ;;  %v1283_v1 = vmov (!%p330_p4), 0   ;;  %v1284_v4 = vmov (!%p330_p4), 1   ;;  %vm361_vm0 = vcmask (!%p330_p4), 1043456  }
  0x88   : > { %333 = sbr.rel (%p330_p4) target bundleno = 310 (0x136), region = 56  ;;  %1027 = vset.pattern.permute.xlu0 (!%p330_p4), %v1283_v1  ;;  %s1554_s11 = sshll.u32 (!%p330_p4), %s334_s19, 3 }
  0x89   : > { %345 = vperm.xlu0 (!%p330_p4), %1027, %v342_v0   ;;  %s337_s0 = scalar_lea.vmem (!%p330_p4), [#allocation6], %s1554_s11  ;;  %s340_s20 = scalar_lea.vmem (!%p330_p4), [#allocation9], %s1554_s11 }
  0x8a   : > { %v338_v2 = vld [vmem:[%s337_s0] sm:$0xff] (!%p330_p4)  ;;  %s391_s8 = scalar_lea.vmem (!%p330_p4), [#allocation12], %s1554_s11  ;;  %s394_s13 = scalar_lea.vmem (!%p330_p4), [#allocation13], %s1554_s11 }
  0x8b   : > { %v341_v3 = vld [vmem:[%s340_s20] sm:$0xff] (!%p330_p4)  ;;  %392 = vst [vmem:[%s391_s8] sm:$0xff] (!%p330_p4), %v338_v2  ;;  %s384_s16 = scalar_lea.vmem (!%p330_p4), [#allocation2], %s1554_s11  ;;  %s388_s14 = scalar_lea.vmem (!%p330_p4), [#allocation3], %s1554_s11 }
  0x8c   : > { %395 = vst [vmem:[%s394_s13] sm:$0xff] (!%p330_p4), %v341_v3 }
  0x8d   : > { %1028 = vset.pattern.permute.xlu0 (!%p330_p4), %v1284_v4 }
  0x8e   : > { %350 = vperm.xlu0 (!%p330_p4), %1028, %v342_v0  }
 0x108   : > { %v346_v5 = vpop.permute.xlu0 %345 }
 0x109   : > { %v348_v7 = vmul.f32 %v346_v5, %v338_v2  ;;  %v355_v8 = vmul.f32 %v346_v5, %v341_v3 }
 0x10d   : > { %v351_v6 = vpop.permute.xlu0 %350 }
 0x10e   : > { %v353_v9 = vmul.f32 %v351_v6, %v341_v3  ;;  %v356_v10 = vmul.f32 %v351_v6, %v338_v2 }
 0x110   : > { %v354_v11 = vsub.f32 %v348_v7, %v353_v9  ;;  %v357_v12 = vadd.f32 %v356_v10, %v355_v8 }
 0x112   : > { %v358_v13 = vmul.f32 %v354_v11, %v354_v11  ;;  %v359_v14 = vmul.f32 %v357_v12, %v357_v12 }
 0x114   : > { %v360_v15 = vadd.f32 %v359_v14, %v358_v13 }
 0x116   : > { %v362_v16 = vsel %vm361_vm0, %v360_v15, 0.0  ;;  %v370_v17 = vrot.slane %v360_v15, 4 }
 0x117   : > { %v363_v18 = vrot.slane %v362_v16, 4 }
 0x118   : > { %v372_v19 = vsel %vm361_vm0, %v370_v17, 0.0 }
 0x119   : > { %v364_v20 = vadd.f32 %v363_v18, %v362_v16  ;;  %v373_v21 = vrot.slane %v372_v19, 4 }
 0x11b   : > { %v365_v22 = vrot.slane %v364_v20, 2  ;;  %v374_v23 = vadd.f32 %v373_v21, %v372_v19 }
 0x11d   : > { %v366_v24 = vadd.f32 %v365_v22, %v364_v20  ;;  %v375_v25 = vrot.slane %v374_v23, 2 }
 0x11f   : > { %v367_v26 = vrot.slane %v366_v24, 1  ;;  %v376_v27 = vadd.f32 %v375_v25, %v374_v23 }
 0x121   : > { %v377_v28 = vrot.slane %v376_v27, 1  ;;  %v368_v29 = vadd.f32 %v367_v26, %v366_v24 }
 0x123   : > { %v378_v30 = vadd.f32 %v377_v28, %v376_v27 }
 0x125   : > { %v379_v31 = vsel %vm361_vm0, %v368_v29, %v378_v30 }
 0x126   : > { %v380_v32 = vadd.f32 1e-08, %v379_v31 }
 0x128   : > { %1029 = vrsqrt.f32 %v380_v32 }
 0x132   : > { %v1030_v33 = vpop.eup %1029 }
 0x133   : > { %v382_v34 = vmul.f32 %v1030_v33, %v354_v11  ;;  %v386_v35 = vmul.f32 %v1030_v33, %v357_v12 }
 0x135   : > { %385 = vst [vmem:[%s384_s16] sm:$0xff] %v382_v34  ;;  %389 = vst [vmem:[%s388_s14] sm:$0xff] %v386_v35 }
 0x136 PF: > { %p838_p0 = scmp.ne.s32.totalorder %s1255_s25, 0 }
 0x137   : > { %s399_s21 = sshra.s32 (!%p838_p0), %s1539_s6, 7  ;;  %vm419_vm1 = vcmask (!%p838_p0), 1043456   ;;  %vm454_vm2 = vcmask (!%p838_p0), 1040384   ;;  %vm456_vm3 = vcmask (!%p838_p0), 1041408   ;;  %vm458_vm4 = vcmask (!%p838_p0), 1042432  }
 0x138   : > { %398 = sbr.rel (%p838_p0) target bundleno = 342 (0x156), region = 60  ;;  %s1567_s5 = sshll.u32 (!%p838_p0), %s399_s21, 3 }
 0x139   : > { %s402_s12 = scalar_lea.vmem (!%p838_p0), [#allocation12], %s1567_s5  ;;  %s405_s15 = scalar_lea.vmem (!%p838_p0), [#allocation13], %s1567_s5 }
 0x13a   : > { %v403_v36 = vld [vmem:[%s402_s12] sm:$0xff] (!%p838_p0)  ;;  %s408_s18 = scalar_lea.vmem (!%p838_p0), [#allocation2], %s1567_s5  ;;  %s411_s19 = scalar_lea.vmem (!%p838_p0), [#allocation3], %s1567_s5 }
 0x13b   : > { %v406_v37 = vld [vmem:[%s405_s15] sm:$0xff] (!%p838_p0)  ;;  %s462_s11 = scalar_lea.vmem (!%p838_p0), [#allocation4], %s1567_s5 }
 0x13c   : > { %v409_v38 = vld [vmem:[%s408_s18] sm:$0xff] (!%p838_p0) }
 0x13d   : > { %v412_v39 = vld [vmem:[%s411_s19] sm:$0xff] (!%p838_p0)  ;;  %v413_v40 = vmul.f32 (!%p838_p0), %v409_v38, %v403_v36  ;;  %v416_v42 = vmul.f32 (!%p838_p0), %v409_v38, %v406_v37 }
 0x13e   : > { %v414_v41 = vmul.f32 (!%p838_p0), %v412_v39, %v406_v37  ;;  %v417_v43 = vmul.f32 (!%p838_p0), %v412_v39, %v403_v36 }
 0x140   : > { %v415_v44 = vadd.f32 %v414_v41, %v413_v40  ;;  %v418_v45 = vsub.f32 %v416_v42, %v417_v43 }
 0x142   : > { %v420_v46 = vsel %vm419_vm1, %v415_v44, 0.0  ;;  %v428_v47 = vrot.slane %v415_v44, 4  ;;  %v437_v48 = vsel %vm419_vm1, %v418_v45, 0.0  ;;  %v445_v49 = vrot.slane %v418_v45, 4 }
 0x143   : > { %v421_v50 = vrot.slane %v420_v46, 4  ;;  %v438_v51 = vrot.slane %v437_v48, 4 }
 0x144   : > { %v430_v52 = vsel %vm419_vm1, %v428_v47, 0.0  ;;  %v447_v53 = vsel %vm419_vm1, %v445_v49, 0.0 }
 0x145   : > { %v422_v54 = vadd.f32 %v421_v50, %v420_v46  ;;  %v431_v55 = vrot.slane %v430_v52, 4  ;;  %v439_v56 = vadd.f32 %v438_v51, %v437_v48  ;;  %v448_v57 = vrot.slane %v447_v53, 4 }
 0x147   : > { %v423_v58 = vrot.slane %v422_v54, 2  ;;  %v432_v59 = vadd.f32 %v431_v55, %v430_v52  ;;  %v440_v60 = vrot.slane %v439_v56, 2  ;;  %v449_v61 = vadd.f32 %v448_v57, %v447_v53 }
 0x149   : > { %v424_v62 = vadd.f32 %v423_v58, %v422_v54  ;;  %v433_v63 = vrot.slane %v432_v59, 2  ;;  %v441_v0 = vadd.f32 %v440_v60, %v439_v56  ;;  %v450_v1 = vrot.slane %v449_v61, 2 }
 0x14b   : > { %v425_v2 = vrot.slane %v424_v62, 1  ;;  %v434_v3 = vadd.f32 %v433_v63, %v432_v59  ;;  %v442_v4 = vrot.slane %v441_v0, 1  ;;  %v451_v5 = vadd.f32 %v450_v1, %v449_v61 }
 0x14d   : > { %v426_v6 = vadd.f32 %v425_v2, %v424_v62  ;;  %v435_v7 = vrot.slane %v434_v3, 1  ;;  %v452_v8 = vrot.slane %v451_v5, 1  ;;  %v443_v9 = vadd.f32 %v442_v4, %v441_v0 }
 0x14f   : > { %v436_v10 = vadd.f32 %v435_v7, %v434_v3  ;;  %v453_v11 = vadd.f32 %v452_v8, %v451_v5 }
 0x151   : > { %v455_v12 = vsel %vm454_vm2, %v426_v6, %v436_v10 }
 0x152   : > { %v457_v13 = vsel %vm456_vm3, %v455_v12, %v443_v9 }
 0x153   : > { %v459_v14 = vsel %vm458_vm4, %v457_v13, %v453_v11 }
 0x154   : > { %v460_v15 = vsel %vm419_vm1, %v459_v14, 0.0 }
 0x155   : > { %463 = vst [vmem:[%s462_s11] sm:$0xff] %v460_v15 }
 0x156 PF: > { %p844_p5 = scmp.ne.s32.totalorder %s1251_s24, 0 }
 0x157   : > { %v1285_v16 = vmov (!%p844_p5), 0.0  }
 0x158   : > { %467 = sbr.rel (%p844_p5) target bundleno = 351 (0x15f), region = 64  ;;  %468 = vst [vmem:[#allocation5] sm:$0xff] (!%p844_p5), %v1285_v16 }
 0x15f PF: > { %v1031_v17 = vld [vmem:[%s1531_s17] sm:$0xff]   ;;  %v1286_v18 = vmov 0.0   ;;  %v1032_v19 = vld [vmem:[%s1531_s17 + $0x8] sm:$0xff]   ;;  %vm1287_vm5 = vmmov 0   ;;  %v1033_v20 = vld [vmem:[%s1531_s17 + $0x10] sm:$0xff]   ;;  %s469_s0 = sshra.s32 %s1539_s6, 7 }
 0x160   : > { %877 = vmatprep.subr.bf16.mxu0 %v1286_v18  ;;  %893 = vmatprep.mubr.msk.bf16.mxu0 %vm1287_vm5, %v1286_v18  ;;  %v1034_v21 = vld [vmem:[%s1531_s17 + $0x18] sm:$0xff]   ;;  %v1035_v22 = vld [vmem:[%s1531_s17 + $0x20] sm:$0xff]   ;;  %v1036_v23 = vld [vmem:[%s1531_s17 + $0x28] sm:$0xff]   ;;  %s845_s20 = sshll.u32 %s469_s0, 3  ;;  %p854_p8 = scmp.ne.s32.totalorder %s1251_s24, 1 }
 0x161   : > { %878 = vmatpush3.bf16.msra.mxu0 %v1031_v17  ;;  %v1037_v24 = vld [vmem:[%s1531_s17 + $0x30] sm:$0xff]   ;;  %v1038_v25 = vld [vmem:[%s1531_s17 + $0x38] sm:$0xff]   ;;  %s472_s8 = scalar_lea.vmem [#allocation4], %s845_s20  ;;  %v587_v34 = vlaneseq (!%p854_p8)  ;;  %s606_s17 = sshra.s32 (!%p854_p8), %s831_s10, 7  ;;  %vm595_vm6 = vcmask (!%p854_p8), 1043456   ;;  %v634_v43 = vld [vmem:[%s1548_s9] sm:$0xff] (!%p854_p8) }
 0x162   : > { %879 = vmatprep.subr.bf16.mxu0 %v1286_v18  ;;  %v473_v26 = vld [vmem:[%s472_s8] sm:$0xff]  ;;  %v475_v28 = vld [vmem:[#allocation5] sm:$0xff]  ;;  %s1592_s6 = sshll.u32 (!%p854_p8), %s606_s17, 3  ;;  %p632_p11 = scmp.eq.s32.totalorder (!%p854_p8), %s1259_s26, 2 }
 0x163   : > { %v474_v27 = vpack.c.bf16 %v473_v26, %v473_v26  ;;  %v588_v35 = vshrl.u32 (!%p854_p8), %v587_v34, 7  ;;  %s621_s24 = scalar_lea.vmem (!%p854_p8), [#allocation12], %s1592_s6  ;;  %s627_s25 = scalar_lea.vmem (!%p854_p8), [#allocation6], %s1592_s6 }
 0x164   : > { %v622_v41 = vld [vmem:[%s621_s24] sm:$0xff] (!%p854_p8)  ;;  %s609_s26 = scalar_lea.vmem (!%p854_p8), [#allocation2], %s1592_s6  ;;  %s612_s13 = scalar_lea.vmem (!%p854_p8), [#allocation3], %s1592_s6 }
 0x165   : > { %880 = vmatpush3.bf16.msra.mxu0 %v1032_v19  ;;  %v589_v37 = vsub.s32 (!%p854_p8), 0, %v588_v35  ;;  %v593_v38 = vsub.s32 (!%p854_p8), 1, %v588_v35  ;;  %v599_v39 = vsub.s32 (!%p854_p8), 2, %v588_v35  ;;  %v603_v40 = vsub.s32 (!%p854_p8), 3, %v588_v35  ;;  %v628_v42 = vld [vmem:[%s627_s25] sm:$0xff] (!%p854_p8)  ;;  %s624_s16 = scalar_lea.vmem (!%p854_p8), [#allocation13], %s1592_s6 }
 0x166   : > { %881 = vmatprep.subr.bf16.mxu0 %v1286_v18  ;;  %v637_v44 = vsub.f32 (!%p854_p8), %v622_v41, %v628_v42  ;;  %v610_v49 = vld [vmem:[%s609_s26] sm:$0xff] (!%p854_p8)  ;;  %s630_s14 = scalar_lea.vmem (!%p854_p8), [#allocation9], %s1592_s6 }
 0x167   : > { %v613_v50 = vld [vmem:[%s612_s13] sm:$0xff] (!%p854_p8) }
 0x168   : > { %v625_v52 = vld [vmem:[%s624_s16] sm:$0xff] (!%p854_p8) }
 0x169   : > { %882 = vmatpush3.bf16.msra.mxu0 %v1033_v20  ;;  %v631_v53 = vld [vmem:[%s630_s14] sm:$0xff] (!%p854_p8) }
 0x16a   : > { %883 = vmatprep.subr.bf16.mxu0 %v1286_v18  ;;  %v642_v57 = vsub.f32 (!%p854_p8), %v625_v52, %v631_v53 }
 0x16d   : > { %884 = vmatpush3.bf16.msra.mxu0 %v1034_v21 }
 0x16e   : > { %885 = vmatprep.subr.bf16.mxu0 %v1286_v18 }
 0x171   : > { %886 = vmatpush3.bf16.msra.mxu0 %v1035_v22 }
 0x172   : > { %887 = vmatprep.subr.bf16.mxu0 %v1286_v18 }
 0x175   : > { %888 = vmatpush3.bf16.msra.mxu0 %v1036_v23 }
 0x176   : > { %889 = vmatprep.subr.bf16.mxu0 %v1286_v18 }
 0x179   : > { %890 = vmatpush3.bf16.msra.mxu0 %v1037_v24 }
 0x17a   : > { %891 = vmatprep.subr.bf16.mxu0 %v1286_v18 }
 0x17d   : > { %892 = vmatpush3.bf16.msra.mxu0 %v1038_v25 }
 0x180   : > { %894 = vmatmul.mubr.bf16.vlgmr.msra.gmra.mrb[0].mxu0 %v474_v27 }
 0x250   : > { %585 = sbr.rel (%p854_p8) target bundleno = 616 (0x268), region = 68 }
 0x253   : > { %v574_v29 = vpop.f32.mrb[0].mxu0 }
 0x254   : > { %v580_v30 = vadd.f32 %v574_v29, %v475_v28  ;;  %v895_v31 = vpop.f32.mrb[1].mxu0 }
 0x255   : > { %v577_v32 = vpop.f32.mrb[2].mxu0 }
 0x256   : > { %581 = vst [vmem:[#allocation5] sm:$0xff] %v580_v30  ;;  %v896_v33 = vpop.f32.mrb[3].mxu0 }
 0x257   : > { %s633_s10 = scalar_select %p632_p11, 0.75, 0.5 }
 0x259   : > { %v635_v51 = vstv %s633_s10 }
 0x25a   : > { %v636_v56 = vmul.f32 %v635_v51, %v634_v43 }
 0x25c   : > { %v638_v62 = vmul.f32 %v637_v44, %v636_v56  ;;  %v643_v63 = vmul.f32 %v642_v57, %v636_v56 }
 0x25d   : > { %v586_v36 = vld [vmem:[#allocation5] sm:$0xff] }
 0x25e   : > { %v590_v45 = vrot.slane %v586_v36, %v589_v37  ;;  %v594_v46 = vrot.slane %v586_v36, %v593_v38  ;;  %v600_v47 = vrot.slane %v586_v36, %v599_v39  ;;  %v604_v48 = vrot.slane %v586_v36, %v603_v40 }
 0x25f   : > { %v639_v2 = vsub.f32 %v622_v41, %v638_v62  ;;  %v644_v3 = vsub.f32 %v625_v52, %v643_v63 }
 0x260   : > { %v596_v54 = vsel %vm595_vm6, %v590_v45, %v594_v46  ;;  %v605_v55 = vsel %vm595_vm6, %v600_v47, %v604_v48 }
 0x261   : > { %v614_v58 = vmul.f32 %v610_v49, %v596_v54  ;;  %v615_v59 = vmul.f32 %v613_v50, %v605_v55  ;;  %v617_v60 = vmul.f32 %v610_v49, %v605_v55  ;;  %v618_v61 = vmul.f32 %v613_v50, %v596_v54 }
 0x263   : > { %v616_v0 = vsub.f32 %v614_v58, %v615_v59  ;;  %v619_v1 = vadd.f32 %v618_v61, %v617_v60 }
 0x265   : > { %v640_v4 = vsub.f32 %v639_v2, %v616_v0  ;;  %v645_v5 = vsub.f32 %v644_v3, %v619_v1 }
 0x267   : > { %641 = vst [vmem:[%s621_s24] sm:$0xff] %v640_v4  ;;  %646 = vst [vmem:[%s624_s16] sm:$0xff] %v645_v5 }
 0x268 PF: > { %p931_p7 = scmp.eq.s32.totalorder %s1374_s7, 11  ;;  %s1288_s9 = smov [#allocation12]  }
 0x269   : > { %s654_s21 = sshll.u32 %s1288_s9, 4  ;;  %s1289_s5 = smov [#allocation13]   ;;  %s655_s21 = int_to_ptr.vmem [resolvable:$true] %s654_s21 }
 0x26a   : > { %s665_s12 = sshll.u32 %s1289_s5, 4  ;;  %s1125_s15 = scalar_lea.vmem %s655_s21, 256  ;;  %s1609_s12 = int_to_ptr.vmem [resolvable:$true] %s665_s12 }
 0x26b   : > { %p1126_p6 = scmp.ne.s32.totalorder %s655_s21, %s1125_s15  ;;  %p1132_p10 = scmp.lt.s32.totalorder %s655_s21, %s655_s21 }
 0x26c   : > { %p1133_p3 = scmp.lt.s32.totalorder %s1125_s15, %s1125_s15 }
 0x26d   : > { %p1127_p1 = pnand %p1126_p6, %p931_p7 }
 0x26e   : > { %p1134_p12 = por %p1133_p3, %p1132_p10 }
 0x26f   : > { %p1128_p9 = pneg %p1127_p1 }
 0x271   : > { %p1135_p13 = pnand %p1134_p12, %p1128_p9 }
 0x273   : > { %1138 = shalt.err (!%p1135_p13)
}
 0x274   : > { %s1729_s11 = sld [smem:[#allocation25_spill]] }
 0x27a   : > { %s1139_s0 = scalar_lea.hbm %s1729_s11, 256 }
 0x27b   : > { %p1140_p2 = scmp.ne.s32.totalorder %s1729_s11, %s1139_s0  ;;  %p1145_p5 = scmp.lt.u32.totalorder %s1139_s0, %s1729_s11 }
 0x27d   : > { %p1141_p4 = pnand %p1140_p2, %p931_p7 }
 0x27f   : > { %p1142_p0 = pneg %p1141_p4 }
 0x281   : > { %p1147_p8 = pnand %p1145_p5, %p1142_p0 }
 0x283   : > { %1150 = shalt.err (!%p1147_p8)
}
 0x284   : > { %908 = dma.vmem_to_hbm [thread:$0]  (%p931_p7), %s655_s21, 256, %s1729_s11, [#allocation8]  }
 0x285   : > { %s1151_s10 = scalar_lea.vmem %s1609_s12, 256  ;;  %p1158_p9 = scmp.lt.s32.totalorder %s1609_s12, %s1609_s12 }
 0x286   : > { %p1152_p11 = scmp.ne.s32.totalorder %s1609_s12, %s1151_s10  ;;  %p1159_p10 = scmp.lt.s32.totalorder %s1151_s10, %s1151_s10 }
 0x288   : > { %p1153_p6 = pnand %p1152_p11, %p931_p7  ;;  %p1160_p3 = por %p1159_p10, %p1158_p9 }
 0x28a   : > { %p1154_p1 = pneg %p1153_p6 }
 0x28c   : > { %p1161_p12 = pnand %p1160_p3, %p1154_p1 }
 0x28e   : > { %1164 = shalt.err (!%p1161_p12)
}
 0x28f   : > { %s1730_s16 = sld [smem:[#allocation26_spill]] }
 0x295   : > { %s1165_s14 = scalar_lea.hbm %s1730_s16, 256 }
 0x296   : > { %p1166_p13 = scmp.ne.s32.totalorder %s1730_s16, %s1165_s14  ;;  %p1171_p0 = scmp.lt.u32.totalorder %s1165_s14, %s1730_s16 }
 0x298   : > { %p1167_p2 = pnand %p1166_p13, %p931_p7 }
 0x29a   : > { %p1168_p4 = pneg %p1167_p2 }
 0x29c   : > { %p1173_p5 = pnand %p1171_p0, %p1168_p4 }
 0x29e   : > { %1176 = shalt.err (!%p1173_p5)
}
 0x29f   : > { %910 = dma.vmem_to_hbm [thread:$0]  (%p931_p7), %s1609_s12, 256, %s1730_s16, [#allocation14]  }
 0x2a0   : > { %1230 = dma.done.wait (%p931_p7), [#allocation8], 256  }
 0x2a1   : > { %1232 = vsyncadd (%p931_p7), [#allocation8], 4294967040 }
 0x2a2   : > { %1234 = dma.done.wait (%p931_p7), [#allocation14], 256  }
 0x2a3   : > { %1236 = vsyncadd (%p931_p7), [#allocation14], 4294967040 }
 0x2a4 PF: > { %s21_s30 = sadd.s32 1, %s1275_s30   ;;  %s1731_s0 = sld [smem:[#allocation23_spill]] }
 0x2a5   : > { %p18_p8 = scmp.ge.s32.totalorder %s21_s30, 14   ;;  %s1732_s12 = sld [smem:[#allocation20_spill]] }
 0x2a6   : > { %s1733_s20 = sld [smem:[#allocation21_spill]]  ;;  %s1734_s8 = sld [smem:[#allocation22_spill]] }
 0x2a7   : > { %s1735_s21 = smov %s1243_s22  ;;  %s1736_s22 = smov %s1247_s23 }
 0x2a8   : > { %s1738_s24 = smov %s1263_s27  ;;  %s1739_s25 = smov %s1267_s28 }
 0x2a9   : > { %s1740_s26 = smov %s1271_s29  ;;  %20 = sbr.rel (!%p18_p8) target bundleno = 12 (0xc), region = 129 }
 0x2aa   : > { %s1737_s23 = smov %s1731_s0 }
 0x2ab   : > { %s1741_s27 = smov %s1732_s12 }
 0x2ac   : > { %s1742_s28 = smov %s1733_s20  ;;  %s1743_s29 = smov %s1734_s8 }
 0x2b0   :  { %682 = vsyncpa [#allocation7], 1 }
 0x2b1   :  { %684 = vsyncpa [#allocation7 + $0x1], 1 }
 0x2b2   :  { %685 = vsyncpa [#allocation10], 1 }
 0x2b3   :  { %686 = vsyncpa [#allocation8], 1 }
 0x2b4   :  { %688 = vsyncpa [#allocation8 + $0x1], 1 }
 0x2b5   :  { %689 = vsyncpa [#allocation14], 1 }

</bundles_post_ra>
